<compile_context>
chip_gen: v7x
topology: tpu7x:2x2x1
jax: 0.10.0
libtpu: 0.0.40
codegen_flags: <defaults>
</compile_context>

<pallas_src>
import functools

import jax
import jax.numpy as jnp
from jax import lax
from jax.experimental import pallas as pl
from jax.experimental.pallas import tpu as pltpu


def _channel_attention_kernel(x_ref, w1_ref, w2_ref, gate_ref, sum_sc, max_sc,
                              *, inv_hw, rem, ragged):
    # x_ref:    (BN, C, THW)  streamed activation tile
    # w1_ref:   (Cr, C)       resident
    # w2_ref:   (C, Cr)       resident
    # gate_ref: (BN, C)       written only on the last spatial step
    # sum_sc / max_sc: (BN, C) f32 running reductions (persist across k steps)
    k = pl.program_id(1)
    last_k = pl.num_programs(1) - 1

    @pl.when(k == 0)
    def _init():
        sum_sc[...] = jnp.zeros_like(sum_sc)
        max_sc[...] = jnp.full_like(max_sc, -jnp.inf)

    x = x_ref[...].astype(jnp.float32)                       # (BN, C, THW)

    def accumulate(x_sum, x_max):
        sum_sc[...] += jnp.sum(x_sum, axis=-1)
        max_sc[...] = jnp.maximum(max_sc[...], jnp.max(x_max, axis=-1))

    if ragged:
        # Mask-free steady state; mask only on the (static) ragged last tile.
        @pl.when(k != last_k)
        def _steady():
            accumulate(x, x)

        @pl.when(k == last_k)
        def _edge():
            lane = lax.broadcasted_iota(jnp.int32, (1, 1, x.shape[-1]), 2)
            valid = lane < rem
            # Select (not multiply): OOB lanes are undefined garbage.
            accumulate(jnp.where(valid, x, 0.0),
                       jnp.where(valid, x, -jnp.inf))
    else:
        accumulate(x, x)

    @pl.when(k == last_k)
    def _finalize():
        # relu(W1@avg + W1@mx) == relu(W1@(avg+mx))  (linearity of 1x1 conv)
        pooled = sum_sc[...] * inv_hw + max_sc[...]           # (BN, C)
        h = lax.dot_general(pooled, w1_ref[...],
                            (((1,), (1,)), ((), ())),
                            preferred_element_type=jnp.float32)   # (BN, Cr)
        h = jnp.maximum(h, 0.0)
        o = lax.dot_general(h, w2_ref[...],
                            (((1,), (1,)), ((), ())),
                            preferred_element_type=jnp.float32)   # (BN, C)
        gate_ref[...] = jax.nn.sigmoid(o).astype(gate_ref.dtype)


def _pick_tiles(N, C, HW, block_hw=None):
    """Choose (block_n, block_hw, num_k).  block_n is N or a multiple of 8."""
    F32 = 4                                   # in-kernel working set is f32
    bytes_per_batch = C * HW * F32

    # Batch folding: amortize the ~0.35us/step overhead for small activations.
    if bytes_per_batch <= 512 * 1024:
        fold = max(1, (2 * 1024 * 1024) // bytes_per_batch)
    else:
        fold = 1
    if fold >= N or N <= 8:
        block_n = N                            # full batch dim -> always legal
    else:
        block_n = max(8, (min(fold, N) // 8) * 8)   # multiple of 8, <= N

    # Spatial tile: near-even split of HW into multiples of 128, f32-budgeted
    # so the double-buffered stream stays well inside every generation's VMEM.
    if block_hw is None:
        budget = 8 * 1024 * 1024
        max_thw = max(128, (budget // (2 * block_n * C * F32)) // 128 * 128)
        num_k = pl.cdiv(HW, max_thw)
        block_hw = pl.cdiv(pl.cdiv(HW, num_k), 128) * 128
    else:
        block_hw = max(128, (block_hw // 128) * 128)
        block_hw = min(block_hw, pl.cdiv(HW, 128) * 128)
    num_k = pl.cdiv(HW, block_hw)
    return block_n, block_hw, num_k


def _gate_2d(x_nchw, w1, w2, block_hw):
    """Returns the (N, C) sigmoid gate (x dtype)."""
    N, C, H, W = x_nchw.shape
    Cr = w1.shape[0]
    HW = H * W
    itemsize = jnp.dtype(x_nchw.dtype).itemsize

    block_n, block_hw, num_k = _pick_tiles(N, C, HW, block_hw)
    num_n = pl.cdiv(N, block_n)
    ragged = (HW % block_hw) != 0
    rem = HW - (num_k - 1) * block_hw          # valid lanes in the last tile

    x_flat = x_nchw.reshape(N, C, HW)          # free: merges minor dims

    kernel = functools.partial(
        _channel_attention_kernel,
        inv_hw=1.0 / HW, rem=rem, ragged=ragged)

    gate = pl.pallas_call(
        kernel,
        out_shape=jax.ShapeDtypeStruct((N, C), x_nchw.dtype),
        grid_spec=pltpu.PrefetchScalarGridSpec(
            num_scalar_prefetch=0,
            grid=(num_n, num_k),
            in_specs=[
                pl.BlockSpec((block_n, C, block_hw), lambda b, k: (b, 0, k)),
                pl.BlockSpec((Cr, C), lambda b, k: (0, 0)),
                pl.BlockSpec((C, Cr), lambda b, k: (0, 0)),
            ],
            out_specs=pl.BlockSpec((block_n, C), lambda b, k: (b, 0)),
            scratch_shapes=[
                pltpu.VMEM((block_n, C), jnp.float32),   # running sum
                pltpu.VMEM((block_n, C), jnp.float32),   # running max
            ],
        ),
        compiler_params=pltpu.CompilerParams(
            dimension_semantics=("parallel", "arbitrary"),
            vmem_limit_bytes=48 * 1024 * 1024,
        ),
        cost_estimate=pl.CostEstimate(
            flops=3 * N * C * HW + 4 * N * C * Cr,
            transcendentals=N * C,
            bytes_accessed=N * C * HW * itemsize
                           + N * C * itemsize + 2 * C * Cr * 4,
        ),
    )(x_flat, w1, w2)
    return gate


@functools.partial(jax.jit, static_argnames=("block_hw",))
def channel_attention_gate(x_nchw, w1, w2, *, block_hw=None):
    """Preferred entry point: returns the (N, C, 1, 1) gate for fused use."""
    N, C = x_nchw.shape[:2]
    return _gate_2d(x_nchw, w1, w2, block_hw).reshape(N, C, 1, 1)


@functools.partial(jax.jit, static_argnames=("block_hw",))
def channel_attention(x_nchw, w1, w2, *, block_hw=None):
    """Matches the PyTorch forward: sigmoid gate expanded to x's shape.

    Note: the broadcast is lazy; if this function's result is consumed inside
    a larger jit it fuses.  Standalone it materializes a full (N,C,H,W) write
    (exactly what expand_as avoids) — prefer channel_attention_gate() then.
    """
    N, C, H, W = x_nchw.shape
    gate = _gate_2d(x_nchw, w1, w2, block_hw).reshape(N, C, 1, 1)
    return jnp.broadcast_to(gate, x_nchw.shape)


def _reference(x, w1, w2):
    avg = jnp.mean(x, axis=(2, 3))                          # (N, C)
    mx = jnp.max(x, axis=(2, 3))                            # (N, C)
    h = jnp.maximum(avg @ w1.T + mx @ w1.T, 0.0)            # (N, Cr)
    o = h @ w2.T                                            # (N, C)
    gate = jax.nn.sigmoid(o)[:, :, None, None]
    return jnp.broadcast_to(gate, x.shape)


if __name__ == "__main__":
    key = jax.random.PRNGKey(0)
    kx1, kx2, kx3, k1, k2 = jax.random.split(key, 5)

    # reduction_ratio=16 requires in_channels >= 16 -> use C=32, Cr=2.
    N, C = 2, 32
    reduction_ratio = 16
    Cr = C // reduction_ratio

    bound1 = 1.0 / jnp.sqrt(C)
    bound2 = 1.0 / jnp.sqrt(Cr)
    w1 = jax.random.uniform(k1, (Cr, C), jnp.float32, -bound1, bound1)
    w2 = jax.random.uniform(k2, (C, Cr), jnp.float32, -bound2, bound2)

    # Case 1: H*W multiple of 128 (no ragged tile), whole batch folded into
    # one block, single grid step.
    x1 = jax.random.normal(kx1, (N, C, 16, 16), dtype=jnp.float32)
    out1 = jax.block_until_ready(channel_attention(x1, w1, w2))
    ref1 = _reference(x1, w1, w2)
    assert out1.shape == x1.shape
    assert jnp.allclose(out1, ref1, atol=1e-5, rtol=1e-5), float(
        jnp.max(jnp.abs(out1 - ref1)))

    # Case 2: H*W=196 with a forced 128-wide tile: multi-step running sum/max
    # plus the masked ragged last tile (no wrapper-side padding anywhere).
    x2 = jax.random.normal(kx2, (N, C, 14, 14), dtype=jnp.float32)
    out2 = jax.block_until_ready(channel_attention(x2, w1, w2, block_hw=128))
    ref2 = _reference(x2, w1, w2)
    assert out2.shape == x2.shape
    assert jnp.allclose(out2, ref2, atol=1e-5, rtol=1e-5), float(
        jnp.max(jnp.abs(out2 - ref2)))

    # Case 3: ragged batch folding (N=12 -> block_n=8, last batch block hangs
    # over the edge) together with a ragged spatial tile.
    x3 = jax.random.normal(kx3, (12, C, 40, 40), dtype=jnp.float32)
    out3 = jax.block_until_ready(channel_attention(x3, w1, w2))
    ref3 = _reference(x3, w1, w2)
    assert out3.shape == x3.shape
    assert jnp.allclose(out3, ref3, atol=1e-5, rtol=1e-5), float(
        jnp.max(jnp.abs(out3 - ref3)))

    print("KERNEL_OK")
</pallas_src>

<mosaic_0001>
module attributes {stable_mosaic.version = 11 : i64} {
  func.func @_channel_attention_kernel(%arg0: i32, %arg1: i32, %arg2: memref<2x32x256xf32, #tpu.memory_space<vmem>>, %arg3: memref<2x32xf32, #tpu.memory_space<vmem>>, %arg4: memref<32x2xf32, #tpu.memory_space<vmem>>, %arg5: memref<2x32xf32, #tpu.memory_space<vmem>>, %arg6: memref<2x32xf32, #tpu.memory_space<vmem>>, %arg7: memref<2x32xf32, #tpu.memory_space<vmem>>) attributes {dimension_semantics = [#tpu.dimension_semantics<parallel>, #tpu.dimension_semantics<arbitrary>], iteration_bounds = array<i64: 1, 1>, scalar_prefetch = 0 : i64, scratch_operands = 2 : i64, tpu.core_type = #tpu.core_type<tc>, window_params = [{transform_indices = @transform_0, window_bounds = array<i64: 2, 32, 256>}, {pipeline_mode = #tpu.pipeline_mode<synchronous>, transform_indices = @transform_1, window_bounds = array<i64: 2, 32>}, {pipeline_mode = #tpu.pipeline_mode<synchronous>, transform_indices = @transform_2, window_bounds = array<i64: 32, 2>}, {transform_indices = @transform_3, window_bounds = array<i64: 2, 32>}]} {
    %c0_i32 = arith.constant 0 : i32
    %0 = arith.cmpi eq, %arg1, %c0_i32 : i32
    %1 = arith.extui %0 : i1 to i32
    %c0_i32_0 = arith.constant 0 : i32
    %2 = arith.cmpi ne, %1, %c0_i32_0 : i32
    scf.if %2 {
      %cst_14 = arith.constant 0.000000e+00 : f32
      %15 = vector.broadcast %cst_14 : f32 to vector<2x32xf32>
      %c0_15 = arith.constant 0 : index
      %c0_16 = arith.constant 0 : index
      %16 = vector.load %arg6[%c0_15, %c0_16] : memref<2x32xf32, #tpu.memory_space<vmem>>, vector<2x32xf32>
      tpu.vector_store %arg6[%c0_15, %c0_16], %15 {strides = array<i32>} : memref<2x32xf32, #tpu.memory_space<vmem>>, vector<2x32xf32>,
      %cst_17 = arith.constant 0xFF800000 : f32
      %17 = vector.broadcast %cst_17 : f32 to vector<2x32xf32>
      %c0_18 = arith.constant 0 : index
      %c0_19 = arith.constant 0 : index
      %18 = vector.load %arg7[%c0_18, %c0_19] : memref<2x32xf32, #tpu.memory_space<vmem>>, vector<2x32xf32>
      tpu.vector_store %arg7[%c0_18, %c0_19], %17 {strides = array<i32>} : memref<2x32xf32, #tpu.memory_space<vmem>>, vector<2x32xf32>,
    } else {
    }
    %c0 = arith.constant 0 : index
    %c0_1 = arith.constant 0 : index
    %c0_2 = arith.constant 0 : index
    %3 = vector.load %arg2[%c0, %c0_1, %c0_2] : memref<2x32x256xf32, #tpu.memory_space<vmem>>, vector<2x32x256xf32>
    %c0_3 = arith.constant 0 : index
    %c0_4 = arith.constant 0 : index
    %4 = vector.load %arg6[%c0_3, %c0_4] : memref<2x32xf32, #tpu.memory_space<vmem>>, vector<2x32xf32>
    %cst = arith.constant dense<0.000000e+00> : vector<2x32xf32>
    %5 = vector.multi_reduction <add>, %3, %cst [2] : vector<2x32x256xf32> to vector<2x32xf32>
    %6 = arith.addf %4, %5 : vector<2x32xf32>
    %c0_5 = arith.constant 0 : index
    %c0_6 = arith.constant 0 : index
    %7 = vector.load %arg6[%c0_5, %c0_6] : memref<2x32xf32, #tpu.memory_space<vmem>>, vector<2x32xf32>
    tpu.vector_store %arg6[%c0_5, %c0_6], %6 {strides = array<i32>} : memref<2x32xf32, #tpu.memory_space<vmem>>, vector<2x32xf32>,
    %c0_7 = arith.constant 0 : index
    %c0_8 = arith.constant 0 : index
    %8 = vector.load %arg7[%c0_7, %c0_8] : memref<2x32xf32, #tpu.memory_space<vmem>>, vector<2x32xf32>
    %cst_9 = arith.constant dense<0xFF800000> : vector<2x32xf32>
    %9 = vector.multi_reduction <maximumf>, %3, %cst_9 [2] : vector<2x32x256xf32> to vector<2x32xf32>
    %10 = arith.maximumf %8, %9 : vector<2x32xf32>
    %c0_10 = arith.constant 0 : index
    %c0_11 = arith.constant 0 : index
    %11 = vector.load %arg7[%c0_10, %c0_11] : memref<2x32xf32, #tpu.memory_space<vmem>>, vector<2x32xf32>
    tpu.vector_store %arg7[%c0_10, %c0_11], %10 {strides = array<i32>} : memref<2x32xf32, #tpu.memory_space<vmem>>, vector<2x32xf32>,
    %c0_i32_12 = arith.constant 0 : i32
    %12 = arith.cmpi eq, %arg1, %c0_i32_12 : i32
    %13 = arith.extui %12 : i1 to i32
    %c0_i32_13 = arith.constant 0 : i32
    %14 = arith.cmpi ne, %13, %c0_i32_13 : i32
    scf.if %14 {
      %c0_14 = arith.constant 0 : index
      %c0_15 = arith.constant 0 : index
      %15 = vector.load %arg6[%c0_14, %c0_15] : memref<2x32xf32, #tpu.memory_space<vmem>>, vector<2x32xf32>
      %cst_16 = arith.constant 3.906250e-03 : f32
      %16 = vector.broadcast %cst_16 : f32 to vector<2x32xf32>
      %17 = arith.mulf %15, %16 : vector<2x32xf32>
      %c0_17 = arith.constant 0 : index
      %c0_18 = arith.constant 0 : index
      %18 = vector.load %arg7[%c0_17, %c0_18] : memref<2x32xf32, #tpu.memory_space<vmem>>, vector<2x32xf32>
      %19 = arith.addf %17, %18 : vector<2x32xf32>
      %c0_19 = arith.constant 0 : index
      %c0_20 = arith.constant 0 : index
      %20 = vector.load %arg3[%c0_19, %c0_20] : memref<2x32xf32, #tpu.memory_space<vmem>>, vector<2x32xf32>
      %cst_21 = arith.constant dense<0.000000e+00> : vector<2x2xf32>
      %21 = tpu.matmul %19, %20, %cst_21 {dimension_numbers = #tpu.dot_dimension_numbers<[1], [1], [0], [0], [0, 0, 1, 0], [], []>} : vector<2x32xf32>, vector<2x32xf32>, vector<2x2xf32> -> vector<2x2xf32>
      %cst_22 = arith.constant 0.000000e+00 : f32
      %22 = vector.broadcast %cst_22 : f32 to vector<2x2xf32>
      %23 = arith.maximumf %21, %22 : vector<2x2xf32>
      %c0_23 = arith.constant 0 : index
      %c0_24 = arith.constant 0 : index
      %24 = vector.load %arg4[%c0_23, %c0_24] : memref<32x2xf32, #tpu.memory_space<vmem>>, vector<32x2xf32>
      %cst_25 = arith.constant dense<0.000000e+00> : vector<2x32xf32>
      %25 = tpu.matmul %23, %24, %cst_25 {dimension_numbers = #tpu.dot_dimension_numbers<[1], [1], [0], [0], [0, 0, 1, 0], [], []>} : vector<2x2xf32>, vector<32x2xf32>, vector<2x32xf32> -> vector<2x32xf32>
      %26 = arith.negf %25 : vector<2x32xf32>
      %27 = math.exp %26 : vector<2x32xf32>
      %cst_26 = arith.constant 1.000000e+00 : f32
      %28 = vector.broadcast %cst_26 : f32 to vector<2x32xf32>
      %29 = arith.addf %28, %27 : vector<2x32xf32>
      %30 = arith.divf %28, %29 : vector<2x32xf32>
      %c0_27 = arith.constant 0 : index
      %c0_28 = arith.constant 0 : index
      %31 = vector.load %arg5[%c0_27, %c0_28] : memref<2x32xf32, #tpu.memory_space<vmem>>, vector<2x32xf32>
      tpu.vector_store %arg5[%c0_27, %c0_28], %30 {strides = array<i32>} : memref<2x32xf32, #tpu.memory_space<vmem>>, vector<2x32xf32>,
    } else {
    }
    return
  }
  func.func @transform_0(%arg0: i32, %arg1: i32) -> (i32, i32, i32) {
    %c0_i32 = arith.constant 0 : i32
    %c0_i32_0 = arith.constant 0 : i32
    return %arg0, %c0_i32, %arg1 : i32, i32, i32
  }
  func.func @transform_1(%arg0: i32, %arg1: i32) -> (i32, i32) {
    %c0_i32 = arith.constant 0 : i32
    %c0_i32_0 = arith.constant 0 : i32
    %c0_i32_1 = arith.constant 0 : i32
    return %c0_i32, %c0_i32_0 : i32, i32
  }
  func.func @transform_2(%arg0: i32, %arg1: i32) -> (i32, i32) {
    %c0_i32 = arith.constant 0 : i32
    %c0_i32_0 = arith.constant 0 : i32
    %c0_i32_1 = arith.constant 0 : i32
    return %c0_i32, %c0_i32_0 : i32, i32
  }
  func.func @transform_3(%arg0: i32, %arg1: i32) -> (i32, i32) {
    %c0_i32 = arith.constant 0 : i32
    %c0_i32_0 = arith.constant 0 : i32
    return %arg0, %c0_i32 : i32, i32
  }
}

</mosaic_0001>

<bundles_post_ra>
// kernel: channel_attention.1
= control target key start
LH: loop header
LB: loop body
LE: loop exit
PB: predicated region body
PF: predicated region fallthrough
CT: control target
= control target key end

     0   :  { %vm18_vm0 = vcmask 254976   ;;  %v431_v30 = vmov 0.0   ;;  %v432_v33 = vmov -inf   ;;  %vm205_vm1 = vcmask 261120   ;;  %s545_s0 = inlined_call_operand.vmem [shape: f32[2,32,256], index: 0, kind: input, shape index: {}]   ;;  %s546_s1 = inlined_call_operand.vmem [shape: f32[2,32], index: 1, kind: input, shape index: {}]   ;;  %s547_s2 = inlined_call_operand.vmem [shape: f32[32,2], index: 2, kind: input, shape index: {}]   ;;  %s548_s3 = inlined_call_operand.vmem [shape: f32[2,32], index: 3, kind: output, shape index: {}]  }
   0x1   :  { %v29_v0 = vld [vmem:[%s545_s0 + $0x40] sm:$0xff]  ;;  %v30_v1 = vld [vmem:[%s545_s0 + $0x48] sm:$0xff]  ;;  %v31_v5 = vld [vmem:[%s545_s0 + $0x50] sm:$0xff]  ;;  %19 = vst.msk [vmem:[#allocation2] sm:$0x3] %vm18_vm0, %v431_v30  ;;  %399 = vmatprep.subr.mxu0 %v431_v30  ;;  %vm433_vm2 = vmmov 0   ;;  %v70_v42 = vlaneseq }
   0x2   :  { %v21_v2 = vld [vmem:[%s545_s0] sm:$0xff]  ;;  %v50_v3 = vadd.f32 %v30_v1, %v29_v0  ;;  %v22_v4 = vld [vmem:[%s545_s0 + $0x8] sm:$0xff]  ;;  %v32_v6 = vld [vmem:[%s545_s0 + $0x58] sm:$0xff]  ;;  %v135_v27 = vmax.f32 %v29_v0, %v30_v1  ;;  %20 = vst.msk [vmem:[#allocation3] sm:$0x3] %vm18_vm0, %v432_v33  ;;  %401 = vmatprep.mubr.msk.f32.mxu0 %vm433_vm2, %v431_v30  ;;  %412 = vmatprep.mubr.msk.f32.mxu1 %vm433_vm2, %v431_v30  ;;  %vm287_vm3 = vcmask 15360  }
   0x3   :  { %v38_v7 = vadd.f32 %v22_v4, %v21_v2  ;;  %v23_v8 = vld [vmem:[%s545_s0 + $0x10] sm:$0xff]  ;;  %v24_v9 = vld [vmem:[%s545_s0 + $0x18] sm:$0xff]  ;;  %v53_v10 = vadd.f32 %v32_v6, %v31_v5  ;;  %v33_v12 = vld [vmem:[%s545_s0 + $0x60] sm:$0xff]  ;;  %v123_v25 = vmax.f32 %v21_v2, %v22_v4  ;;  %v138_v26 = vmax.f32 %v31_v5, %v32_v6 }
   0x4   :  { %51 = vadd.xlane.f32.xlu1 %v50_v3  ;;  %v41_v11 = vadd.f32 %v24_v9, %v23_v8  ;;  %v34_v13 = vld [vmem:[%s545_s0 + $0x68] sm:$0xff]  ;;  %v25_v14 = vld [vmem:[%s545_s0 + $0x20] sm:$0xff]  ;;  %v35_v18 = vld [vmem:[%s545_s0 + $0x70] sm:$0xff]  ;;  %v126_v24 = vmax.f32 %v23_v8, %v24_v9  ;;  %v434_v35 = vmov 0.0|0.0   ;;  %v71_v43 = vand.u32 127, %v70_v42 }
   0x5   :  { %39 = vadd.xlane.f32.xlu0 %v38_v7  ;;  %v26_v15 = vld [vmem:[%s545_s0 + $0x28] sm:$0xff]  ;;  %v56_v16 = vadd.f32 %v34_v13, %v33_v12  ;;  %v36_v19 = vld [vmem:[%s545_s0 + $0x78] sm:$0xff]  ;;  %v27_v20 = vld [vmem:[%s545_s0 + $0x30] sm:$0xff]  ;;  %v141_v28 = vmax.f32 %v33_v12, %v34_v13  ;;  %415 = vmatprep.subr.bf16.mxu1 %v434_v35  ;;  %v73_v48 = vshrl.u32 %v70_v42, 7  ;;  %vm81_vm5 = vcmask 130112  }
   0x6   :  { %v44_v17 = vadd.f32 %v26_v15, %v25_v14  ;;  %v28_v21 = vld [vmem:[%s545_s0 + $0x38] sm:$0xff]  ;;  %v59_v22 = vadd.f32 %v36_v19, %v35_v18  ;;  %v129_v29 = vmax.f32 %v25_v14, %v26_v15  ;;  %v144_v31 = vmax.f32 %v35_v18, %v36_v19  ;;  %v204_v34 = vld [vmem:[%s546_s1] sm:$0x3]  ;;  %v284_v37 = vld [vmem:[%s547_s2 + $0x8] sm:$0xff] }
   0x7   :  { %v47_v23 = vadd.f32 %v28_v21, %v27_v20  ;;  %v132_v32 = vmax.f32 %v27_v20, %v28_v21  ;;  %400 = vmatpush3.xpose.msk.msra.mxu0 %vm205_vm1, %v204_v34  ;;  %v283_v36 = vld [vmem:[%s547_s2] sm:$0xff]  ;;  %vm417_vm4 = vmpackc.low %vm287_vm3, %vm287_vm3  ;;  %v285_v39 = vld [vmem:[%s547_s2 + $0x10] sm:$0xff]  ;;  %v76_v46 = vadd.s32 4294967288, %v71_v43  ;;  %v83_v47 = vadd.s32 4294967280, %v71_v43 }
   0x8   :  { %54 = vadd.xlane.f32.xlu1 %v53_v10  ;;  %v416_v38 = vpack.c.bf16 %v284_v37, %v283_v36  ;;  %v286_v40 = vld [vmem:[%s547_s2 + $0x18] sm:$0xff]  ;;  %v90_v52 = vadd.s32 4294967272, %v71_v43  ;;  %v74_v54 = vsub.s32 %v71_v43, %v73_v48  ;;  %vm88_vm6 = vcmask 195712   ;;  %v37_v9 = vld [vmem:[#allocation2] sm:$0x3] }
   0x9   :  { %42 = vadd.xlane.f32.xlu0 %v41_v11  ;;  %v420_v41 = vpack.c.bf16 %v286_v40, %v285_v39  ;;  %v79_v50 = vsub.s32 %v76_v46, %v73_v48  ;;  %v86_v53 = vsub.s32 %v83_v47, %v73_v48  ;;  %vm95_vm7 = vcmask 261312   ;;  %v122_v34 = vld [vmem:[#allocation3] sm:$0x3] }
   0xa   :  { %418 = vmatpush3.bf16.xpose.msk.msra.mxu1 %vm417_vm4, %v416_v38  ;;  %v93_v58 = vsub.s32 %v90_v52, %v73_v48  ;;  %vm116_vm8 = vcmask 1041409  }
   0xb   :  { %419 = vmatprep.subr.bf16.mxu1 %v434_v35 }
   0xc   :  { %57 = vadd.xlane.f32.xlu1 %v56_v16 }
   0xd   :  { %45 = vadd.xlane.f32.xlu0 %v44_v17 }
  0x10   :  { %60 = vadd.xlane.f32.xlu1 %v59_v22 }
  0x11   :  { %48 = vadd.xlane.f32.xlu0 %v47_v23 }
  0x12   :  { %422 = vmatpush3.bf16.xpose.msk.msra.mxu1 %vm417_vm4, %v420_v41 }
  0x14   :  { %127 = vmax.xlane.f32.xlu1 %v126_v24 }
  0x15   :  { %124 = vmax.xlane.f32.xlu0 %v123_v25 }
  0x18   :  { %139 = vmax.xlane.f32.xlu1 %v138_v26 }
  0x19   :  { %136 = vmax.xlane.f32.xlu0 %v135_v27 }
  0x1c   :  { %142 = vmax.xlane.f32.xlu1 %v141_v28 }
  0x1d   :  { %130 = vmax.xlane.f32.xlu0 %v129_v29 }
  0x20   :  { %145 = vmax.xlane.f32.xlu1 %v144_v31 }
  0x21   :  { %133 = vmax.xlane.f32.xlu0 %v132_v32 }
  0x91   :  { %v52_v44 = vpop.xlane.xlu1 %51 }
  0x92   :  { %v40_v45 = vpop.xlane.xlu0 %39  ;;  %v100_v61 = vrot.slane %v52_v44, %v74_v54 }
  0x93   :  { %v75_v63 = vrot.slane %v40_v45, %v74_v54 }
  0x95   :  { %v55_v49 = vpop.xlane.xlu1 %54 }
  0x96   :  { %v43_v51 = vpop.xlane.xlu0 %42  ;;  %v104_v56 = vrot.slane %v55_v49, %v79_v50 }
  0x97   :  { %v80_v59 = vrot.slane %v43_v51, %v79_v50 }
  0x98   :  { %v105_v1 = vsel %vm81_vm5, %v104_v56, %v100_v61 }
  0x99   :  { %v58_v55 = vpop.xlane.xlu1 %57  ;;  %v82_v4 = vsel %vm81_vm5, %v80_v59, %v75_v63 }
  0x9a   :  { %v46_v57 = vpop.xlane.xlu0 %45  ;;  %v109_v60 = vrot.slane %v58_v55, %v86_v53 }
  0x9b   :  { %v87_v62 = vrot.slane %v46_v57, %v86_v53 }
  0x9c   :  { %v110_v5 = vsel %vm88_vm6, %v109_v60, %v105_v1 }
  0x9d   :  { %v61_v0 = vpop.xlane.xlu1 %60  ;;  %v89_v7 = vsel %vm88_vm6, %v87_v62, %v82_v4 }
  0x9e   :  { %v114_v2 = vrot.slane %v61_v0, %v93_v58  ;;  %v49_v3 = vpop.xlane.xlu0 %48 }
  0x9f   :  { %v94_v6 = vrot.slane %v49_v3, %v93_v58 }
  0xa0   :  { %v115_v8 = vsel %vm95_vm7, %v114_v2, %v110_v5 }
  0xa1   :  { %v96_v10 = vsel %vm95_vm7, %v94_v6, %v89_v7  ;;  %v128_v11 = vpop.xlane.xlu1 %127 }
  0xa2   :  { %v117_v12 = vsel %vm116_vm8, %v115_v8, %v96_v10  ;;  %v125_v13 = vpop.xlane.xlu0 %124  ;;  %v162_v21 = vrot.slane %v128_v11, %v79_v50 }
  0xa3   :  { %v119_v14 = vadd.f32 %v117_v12, %v37_v9  ;;  %v158_v22 = vrot.slane %v125_v13, %v74_v54 }
  0xa5   :  { %v140_v15 = vpop.xlane.xlu1 %139  ;;  %121 = vst.msk [vmem:[#allocation2] sm:$0x3] %vm18_vm0, %v119_v14  ;;  %v163_v29 = vsel %vm81_vm5, %v162_v21, %v158_v22 }
  0xa6   :  { %v137_v16 = vpop.xlane.xlu0 %136  ;;  %v181_v18 = vrot.slane %v140_v15, %v79_v50 }
  0xa7   :  { %v177_v19 = vrot.slane %v137_v16, %v74_v54 }
  0xa9   :  { %v143_v17 = vpop.xlane.xlu1 %142  ;;  %v182_v26 = vsel %vm81_vm5, %v181_v18, %v177_v19 }
  0xaa   :  { %v131_v20 = vpop.xlane.xlu0 %130  ;;  %v186_v23 = vrot.slane %v143_v17, %v86_v53 }
  0xab   :  { %v167_v24 = vrot.slane %v131_v20, %v86_v53 }
  0xac   :  { %v187_v30 = vsel %vm88_vm6, %v186_v23, %v182_v26  ;;  %v200_v38 = vld [vmem:[#allocation2] sm:$0x3] }
  0xad   :  { %v146_v25 = vpop.xlane.xlu1 %145  ;;  %v168_v32 = vsel %vm88_vm6, %v167_v24, %v163_v29  ;;  %v201_v39 = vmul.f32 0.00390625, %v200_v38 }
  0xae   :  { %v191_v27 = vrot.slane %v146_v25, %v93_v58  ;;  %v134_v28 = vpop.xlane.xlu0 %133 }
  0xaf   :  { %v172_v31 = vrot.slane %v134_v28, %v93_v58 }
  0xb0   :  { %v192_v33 = vsel %vm95_vm7, %v191_v27, %v187_v30 }
  0xb1   :  { %v173_v35 = vsel %vm95_vm7, %v172_v31, %v168_v32 }
  0xb2   :  { %v193_v36 = vsel %vm116_vm8, %v192_v33, %v173_v35 }
  0xb3   :  { %v195_v37 = vmax.f32 %v122_v34, %v193_v36 }
  0xb5   :  { %196 = vst.msk [vmem:[#allocation3] sm:$0x3] %vm18_vm0, %v195_v37 }
  0xbc   :  { %v202_v40 = vld [vmem:[#allocation3] sm:$0x3] }
  0xbd   :  { %v203_v41 = vadd.f32 %v202_v40, %v201_v39 }
  0xbf   :  { %402 = vmatmul.mubr.msk.f32.vlgmr.msra.gmra.mrb[0].mxu0 %vm205_vm1, %v203_v41 }
 0x192   :  { %v278_v42 = vpop.f32.mrb[0].mxu0 }
 0x193   :  { %v282_v43 = vmax.f32 %v278_v42, 0.0  ;;  %v403_v44 = vpop.f32.mrb[1].mxu0 }
 0x195   :  { %413 = vmatmul.mubr.msk.f32.vlgmr.msra.gmra.mrb[0].mxu1 %vm287_vm3, %v282_v43 }
 0x268   :  { %v369_v45 = vpop.f32.mrb[0].mxu1 }
 0x269   :  { %v391_v46 = vmul.f32 -1.442695, %v369_v45  ;;  %v414_v47 = vpop.f32.mrb[1].mxu1 }
 0x26b   :  { %427 = vpow2.f32 %v391_v46 }
 0x275   :  { %v428_v48 = vpop.eup %427 }
 0x276   :  { %v376_v49 = vadd.f32 1.0, %v428_v48 }
 0x278   :  { %429 = vrcp.f32 %v376_v49 }
 0x282   :  { %v430_v50 = vpop.eup %429 }
 0x283   :  { %379 = vst.msk [vmem:[%s548_s3] sm:$0x3] %vm18_vm0, %v430_v50 }

</bundles_post_ra>
